<compile_context>
chip_gen: v5e
topology: v5e:2x2
jax: 0.10.0
libtpu: 0.0.40
codegen_flags: <defaults>
</compile_context>

<pallas_src>
import jax
import jax.numpy as jnp
from jax import lax
from jax.experimental import pallas as pl
from jax.experimental.pallas import tpu as pltpu


def bert_lstm_kernel(x_ref, wih_ref, whh_ref, b_ref, o_ref):
    # x_ref  : (B, S, H)   BERT output hidden states (B may be 1 under the v7x grid)
    # wih_ref: (H, 4H)     input->gate weights (transposed), gate order [i|f|g|o]
    # whh_ref: (H, 4H)     hidden->gate weights (transposed)
    # b_ref  : (1, 4H)     combined bias (b_ih + b_hh)
    # o_ref  : (B, S, H)   LSTM outputs, batch-first (matches torch batch_first=True)
    B, S, H = x_ref.shape
    H4 = wih_ref.shape[1]

    # One relayout to time-major, then ONE wide fused MXU matmul covering every
    # timestep and all four gates: (S*B, H) x (H, 4H) -> 128-lane-dense result.
    x_tm = jnp.transpose(x_ref[...], (1, 0, 2)).reshape(S * B, H)   # (S*B, H)
    xproj = jnp.dot(x_tm, wih_ref[...], preferred_element_type=jnp.float32)
    xproj = (xproj + b_ref[...]).reshape(S, B, H4)                  # time-major

    whh = whh_ref[...]
    h = jnp.zeros((B, H), jnp.float32)
    c = jnp.zeros((B, H), jnp.float32)

    # Sequential recurrence over time; S is small & static -> fully unrolled.
    # (For S beyond ~16 this should become a lax.fori_loop carrying (h, c).)
    for t in range(S):
        # One fused matmul per step covers all four gates: (B, H) x (H, 4H).
        # (v5e micro-opt not applied: keep w_hh resident in the MXU via
        #  pltpu.matmul_push_rhs / matmul_acc_lhs / matmul_pop.)
        gates = xproj[t] + jnp.dot(h, whh, preferred_element_type=jnp.float32)

        # Full-vreg EUP pushes, then cheap lane sub-slices of the activated vregs.
        sig = jax.nn.sigmoid(gates)
        tah = jnp.tanh(gates)
        i_g = sig[:, 0 * H:1 * H]   # input gate
        f_g = sig[:, 1 * H:2 * H]   # forget gate
        g_g = tah[:, 2 * H:3 * H]   # cell candidate
        o_g = sig[:, 3 * H:4 * H]   # output gate

        c = f_g * c + i_g * g_g
        h = o_g * jnp.tanh(c)
        o_ref[:, t, :] = h.astype(o_ref.dtype)   # batch-first store, static index


def bert_lstm_forward(hidden_states, w_ih, w_hh, b_ih, b_hh):
    """hidden_states: (B, S, H) float32 -- stands in for bert(x)[0].
       w_ih, w_hh: (4H, H); b_ih, b_hh: (4H,) -- torch nn.LSTM params, gates [i,f,g,o]."""
    B, S, H = hidden_states.shape
    w_ih_t = jnp.transpose(w_ih)                 # (H, 4H)
    w_hh_t = jnp.transpose(w_hh)                 # (H, 4H)
    bias = (b_ih + b_hh).reshape(1, 4 * H)       # fold the two biases into one

    out_shape = jax.ShapeDtypeStruct((B, S, H), hidden_states.dtype)

    # v7x has 2 TensorCores per chip: shard the independent per-batch
    # recurrences across them. v5e/v6e (single TC): grid-less single call.
    try:
        kind = jax.devices()[0].device_kind.lower()
    except Exception:  # pragma: no cover - defensive; fall back to grid-less
        kind = ""
    two_tensorcores = ("v7" in kind) or ("7x" in kind)

    if two_tensorcores and B > 1:
        return pl.pallas_call(
            bert_lstm_kernel,
            out_shape=out_shape,
            grid=(B,),
            in_specs=[
                pl.BlockSpec((1, S, H), lambda b: (b, 0, 0)),
                pl.BlockSpec((H, 4 * H), lambda b: (0, 0)),
                pl.BlockSpec((H, 4 * H), lambda b: (0, 0)),
                pl.BlockSpec((1, 4 * H), lambda b: (0, 0)),
            ],
            out_specs=pl.BlockSpec((1, S, H), lambda b: (b, 0, 0)),
            compiler_params=pltpu.CompilerParams(
                dimension_semantics=("parallel",)),
        )(hidden_states, w_ih_t, w_hh_t, bias)

    # Grid-less: whole problem (<40 KB) resident in VMEM, single invocation.
    return pl.pallas_call(
        bert_lstm_kernel,
        out_shape=out_shape,
        in_specs=[pl.BlockSpec(memory_space=pltpu.MemorySpace.VMEM)] * 4,
        out_specs=pl.BlockSpec(memory_space=pltpu.MemorySpace.VMEM),
    )(hidden_states, w_ih_t, w_hh_t, bias)


def bert_lstm_reference(hidden_states, w_ih, w_hh, b_ih, b_hh):
    """Pure-JAX reference matching torch nn.LSTM(batch_first=True) semantics."""
    B, S, H = hidden_states.shape
    hi = lax.Precision.HIGHEST

    def step(carry, x_t):
        h, c = carry
        gates = (jnp.dot(x_t, w_ih.T, precision=hi) + b_ih
                 + jnp.dot(h, w_hh.T, precision=hi) + b_hh)
        i = jax.nn.sigmoid(gates[:, 0 * H:1 * H])
        f = jax.nn.sigmoid(gates[:, 1 * H:2 * H])
        g = jnp.tanh(gates[:, 2 * H:3 * H])
        o = jax.nn.sigmoid(gates[:, 3 * H:4 * H])
        c = f * c + i * g
        h = o * jnp.tanh(c)
        return (h, c), h

    xs = jnp.transpose(hidden_states, (1, 0, 2))           # (S, B, H)
    init = (jnp.zeros((B, H), jnp.float32), jnp.zeros((B, H), jnp.float32))
    _, hs = lax.scan(step, init, xs)
    return jnp.transpose(hs, (1, 0, 2))                    # (B, S, H)


if __name__ == "__main__":
    # Small shapes consistent with the module's forward: batch=2, seq=8,
    # hidden=32 (stand-in for BERT's hidden_size).
    B, S, H = 2, 8, 32

    key = jax.random.PRNGKey(0)
    kx, k1, k2, k3, k4 = jax.random.split(key, 5)

    # Stand-in for bert(x)[0] (pretrained BERT not loadable in-script).
    hidden_states = jax.random.normal(kx, (B, S, H), dtype=jnp.float32)

    # torch nn.LSTM default init: U(-1/sqrt(H), 1/sqrt(H)).
    bound = 1.0 / (H ** 0.5)
    w_ih = jax.random.uniform(k1, (4 * H, H), jnp.float32, -bound, bound)
    w_hh = jax.random.uniform(k2, (4 * H, H), jnp.float32, -bound, bound)
    b_ih = jax.random.uniform(k3, (4 * H,), jnp.float32, -bound, bound)
    b_hh = jax.random.uniform(k4, (4 * H,), jnp.float32, -bound, bound)

    out = bert_lstm_forward(hidden_states, w_ih, w_hh, b_ih, b_hh)
    out = jax.block_until_ready(out)

    ref = bert_lstm_reference(hidden_states, w_ih, w_hh, b_ih, b_hh)
    assert out.shape == (B, S, H)
    # Tolerance accounts for possible bf16-pass MXU lowering of f32 dots at
    # default precision inside the kernel (reference is full f32 HIGHEST).
    assert jnp.allclose(out, ref, atol=2e-3, rtol=2e-3), "mismatch vs reference"

    print("KERNEL_OK")
</pallas_src>

<mosaic_0001>
module attributes {stable_mosaic.version = 11 : i64} {
  func.func @bert_lstm_kernel(%arg0: memref<2x8x32xf32, #tpu.memory_space<vmem>>, %arg1: memref<32x128xf32, #tpu.memory_space<vmem>>, %arg2: memref<32x128xf32, #tpu.memory_space<vmem>>, %arg3: memref<1x128xf32, #tpu.memory_space<vmem>>, %arg4: memref<2x8x32xf32, #tpu.memory_space<vmem>>) attributes {dimension_semantics = [], scalar_prefetch = 0 : i64, scratch_operands = 0 : i64, tpu.core_type = #tpu.core_type<tc>} {
    %c0 = arith.constant 0 : index
    %c0_0 = arith.constant 0 : index
    %c0_1 = arith.constant 0 : index
    %0 = vector.load %arg0[%c0, %c0_0, %c0_1] : memref<2x8x32xf32, #tpu.memory_space<vmem>>, vector<2x8x32xf32>
    %1 = tpu.transpose %0, [1, 0, 2] : vector<2x8x32xf32> -> vector<8x2x32xf32>
    %2 = vector.shape_cast %1 : vector<8x2x32xf32> to vector<16x32xf32>
    %c0_2 = arith.constant 0 : index
    %c0_3 = arith.constant 0 : index
    %3 = vector.load %arg1[%c0_2, %c0_3] : memref<32x128xf32, #tpu.memory_space<vmem>>, vector<32x128xf32>
    %cst = arith.constant dense<0.000000e+00> : vector<16x128xf32>
    %4 = tpu.matmul %2, %3, %cst {dimension_numbers = #tpu.dot_dimension_numbers<[1], [0], [0], [1], [0, 0, 1, 1], [], []>} : vector<16x32xf32>, vector<32x128xf32>, vector<16x128xf32> -> vector<16x128xf32>
    %c0_4 = arith.constant 0 : index
    %c0_5 = arith.constant 0 : index
    %5 = vector.load %arg3[%c0_4, %c0_5] : memref<1x128xf32, #tpu.memory_space<vmem>>, vector<1x128xf32>
    %6 = vector.broadcast %5 : vector<1x128xf32> to vector<16x128xf32>
    %7 = arith.addf %4, %6 : vector<16x128xf32>
    %8 = vector.shape_cast %7 : vector<16x128xf32> to vector<8x2x128xf32>
    %c0_6 = arith.constant 0 : index
    %c0_7 = arith.constant 0 : index
    %9 = vector.load %arg2[%c0_6, %c0_7] : memref<32x128xf32, #tpu.memory_space<vmem>>, vector<32x128xf32>
    %cst_8 = arith.constant 0.000000e+00 : f32
    %10 = vector.broadcast %cst_8 : f32 to vector<2x32xf32>
    %cst_9 = arith.constant 0.000000e+00 : f32
    %11 = vector.broadcast %cst_9 : f32 to vector<2x32xf32>
    %12 = vector.extract_strided_slice %8 {offsets = [0, 0, 0], sizes = [1, 2, 128], strides = [1, 1, 1]} : vector<8x2x128xf32> to vector<1x2x128xf32>
    %13 = vector.shape_cast %12 : vector<1x2x128xf32> to vector<2x128xf32>
    %cst_10 = arith.constant dense<0.000000e+00> : vector<2x128xf32>
    %14 = tpu.matmul %10, %9, %cst_10 {dimension_numbers = #tpu.dot_dimension_numbers<[1], [0], [0], [1], [0, 0, 1, 1], [], []>} : vector<2x32xf32>, vector<32x128xf32>, vector<2x128xf32> -> vector<2x128xf32>
    %15 = arith.addf %13, %14 : vector<2x128xf32>
    %16 = arith.negf %15 : vector<2x128xf32>
    %17 = math.exp %16 : vector<2x128xf32>
    %cst_11 = arith.constant 1.000000e+00 : f32
    %18 = vector.broadcast %cst_11 : f32 to vector<2x128xf32>
    %19 = arith.addf %18, %17 : vector<2x128xf32>
    %20 = arith.divf %18, %19 : vector<2x128xf32>
    %21 = math.tanh %15 : vector<2x128xf32>
    %22 = vector.extract_strided_slice %20 {offsets = [0, 0], sizes = [2, 32], strides = [1, 1]} : vector<2x128xf32> to vector<2x32xf32>
    %23 = vector.extract_strided_slice %20 {offsets = [0, 32], sizes = [2, 32], strides = [1, 1]} : vector<2x128xf32> to vector<2x32xf32>
    %24 = vector.extract_strided_slice %21 {offsets = [0, 64], sizes = [2, 32], strides = [1, 1]} : vector<2x128xf32> to vector<2x32xf32>
    %25 = vector.extract_strided_slice %20 {offsets = [0, 96], sizes = [2, 32], strides = [1, 1]} : vector<2x128xf32> to vector<2x32xf32>
    %26 = arith.mulf %23, %11 : vector<2x32xf32>
    %27 = arith.mulf %22, %24 : vector<2x32xf32>
    %28 = arith.addf %26, %27 : vector<2x32xf32>
    %29 = math.tanh %28 : vector<2x32xf32>
    %30 = arith.mulf %25, %29 : vector<2x32xf32>
    %c0_12 = arith.constant 0 : index
    %c0_13 = arith.constant 0 : index
    %c0_14 = arith.constant 0 : index
    %31 = vector.load %arg4[%c0_12, %c0_13, %c0_14] : memref<2x8x32xf32, #tpu.memory_space<vmem>>, vector<2x1x32xf32>
    %32 = vector.shape_cast %31 : vector<2x1x32xf32> to vector<2x32xf32>
    %33 = vector.shape_cast %30 : vector<2x32xf32> to vector<2x1x32xf32>
    tpu.vector_store %arg4[%c0_12, %c0_13, %c0_14], %33 {strides = array<i32>} : memref<2x8x32xf32, #tpu.memory_space<vmem>>, vector<2x1x32xf32>,
    %34 = vector.extract_strided_slice %8 {offsets = [1, 0, 0], sizes = [1, 2, 128], strides = [1, 1, 1]} : vector<8x2x128xf32> to vector<1x2x128xf32>
    %35 = vector.shape_cast %34 : vector<1x2x128xf32> to vector<2x128xf32>
    %cst_15 = arith.constant dense<0.000000e+00> : vector<2x128xf32>
    %36 = tpu.matmul %30, %9, %cst_15 {dimension_numbers = #tpu.dot_dimension_numbers<[1], [0], [0], [1], [0, 0, 1, 1], [], []>} : vector<2x32xf32>, vector<32x128xf32>, vector<2x128xf32> -> vector<2x128xf32>
    %37 = arith.addf %35, %36 : vector<2x128xf32>
    %38 = arith.negf %37 : vector<2x128xf32>
    %39 = math.exp %38 : vector<2x128xf32>
    %cst_16 = arith.constant 1.000000e+00 : f32
    %40 = vector.broadcast %cst_16 : f32 to vector<2x128xf32>
    %41 = arith.addf %40, %39 : vector<2x128xf32>
    %42 = arith.divf %40, %41 : vector<2x128xf32>
    %43 = math.tanh %37 : vector<2x128xf32>
    %44 = vector.extract_strided_slice %42 {offsets = [0, 0], sizes = [2, 32], strides = [1, 1]} : vector<2x128xf32> to vector<2x32xf32>
    %45 = vector.extract_strided_slice %42 {offsets = [0, 32], sizes = [2, 32], strides = [1, 1]} : vector<2x128xf32> to vector<2x32xf32>
    %46 = vector.extract_strided_slice %43 {offsets = [0, 64], sizes = [2, 32], strides = [1, 1]} : vector<2x128xf32> to vector<2x32xf32>
    %47 = vector.extract_strided_slice %42 {offsets = [0, 96], sizes = [2, 32], strides = [1, 1]} : vector<2x128xf32> to vector<2x32xf32>
    %48 = arith.mulf %45, %28 : vector<2x32xf32>
    %49 = arith.mulf %44, %46 : vector<2x32xf32>
    %50 = arith.addf %48, %49 : vector<2x32xf32>
    %51 = math.tanh %50 : vector<2x32xf32>
    %52 = arith.mulf %47, %51 : vector<2x32xf32>
    %c0_17 = arith.constant 0 : index
    %c1 = arith.constant 1 : index
    %c0_18 = arith.constant 0 : index
    %53 = vector.load %arg4[%c0_17, %c1, %c0_18] : memref<2x8x32xf32, #tpu.memory_space<vmem>>, vector<2x1x32xf32>
    %54 = vector.shape_cast %53 : vector<2x1x32xf32> to vector<2x32xf32>
    %55 = vector.shape_cast %52 : vector<2x32xf32> to vector<2x1x32xf32>
    tpu.vector_store %arg4[%c0_17, %c1, %c0_18], %55 {strides = array<i32>} : memref<2x8x32xf32, #tpu.memory_space<vmem>>, vector<2x1x32xf32>,
    %56 = vector.extract_strided_slice %8 {offsets = [2, 0, 0], sizes = [1, 2, 128], strides = [1, 1, 1]} : vector<8x2x128xf32> to vector<1x2x128xf32>
    %57 = vector.shape_cast %56 : vector<1x2x128xf32> to vector<2x128xf32>
    %cst_19 = arith.constant dense<0.000000e+00> : vector<2x128xf32>
    %58 = tpu.matmul %52, %9, %cst_19 {dimension_numbers = #tpu.dot_dimension_numbers<[1], [0], [0], [1], [0, 0, 1, 1], [], []>} : vector<2x32xf32>, vector<32x128xf32>, vector<2x128xf32> -> vector<2x128xf32>
    %59 = arith.addf %57, %58 : vector<2x128xf32>
    %60 = arith.negf %59 : vector<2x128xf32>
    %61 = math.exp %60 : vector<2x128xf32>
    %cst_20 = arith.constant 1.000000e+00 : f32
    %62 = vector.broadcast %cst_20 : f32 to vector<2x128xf32>
    %63 = arith.addf %62, %61 : vector<2x128xf32>
    %64 = arith.divf %62, %63 : vector<2x128xf32>
    %65 = math.tanh %59 : vector<2x128xf32>
    %66 = vector.extract_strided_slice %64 {offsets = [0, 0], sizes = [2, 32], strides = [1, 1]} : vector<2x128xf32> to vector<2x32xf32>
    %67 = vector.extract_strided_slice %64 {offsets = [0, 32], sizes = [2, 32], strides = [1, 1]} : vector<2x128xf32> to vector<2x32xf32>
    %68 = vector.extract_strided_slice %65 {offsets = [0, 64], sizes = [2, 32], strides = [1, 1]} : vector<2x128xf32> to vector<2x32xf32>
    %69 = vector.extract_strided_slice %64 {offsets = [0, 96], sizes = [2, 32], strides = [1, 1]} : vector<2x128xf32> to vector<2x32xf32>
    %70 = arith.mulf %67, %50 : vector<2x32xf32>
    %71 = arith.mulf %66, %68 : vector<2x32xf32>
    %72 = arith.addf %70, %71 : vector<2x32xf32>
    %73 = math.tanh %72 : vector<2x32xf32>
    %74 = arith.mulf %69, %73 : vector<2x32xf32>
    %c0_21 = arith.constant 0 : index
    %c2 = arith.constant 2 : index
    %c0_22 = arith.constant 0 : index
    %75 = vector.load %arg4[%c0_21, %c2, %c0_22] : memref<2x8x32xf32, #tpu.memory_space<vmem>>, vector<2x1x32xf32>
    %76 = vector.shape_cast %75 : vector<2x1x32xf32> to vector<2x32xf32>
    %77 = vector.shape_cast %74 : vector<2x32xf32> to vector<2x1x32xf32>
    tpu.vector_store %arg4[%c0_21, %c2, %c0_22], %77 {strides = array<i32>} : memref<2x8x32xf32, #tpu.memory_space<vmem>>, vector<2x1x32xf32>,
    %78 = vector.extract_strided_slice %8 {offsets = [3, 0, 0], sizes = [1, 2, 128], strides = [1, 1, 1]} : vector<8x2x128xf32> to vector<1x2x128xf32>
    %79 = vector.shape_cast %78 : vector<1x2x128xf32> to vector<2x128xf32>
    %cst_23 = arith.constant dense<0.000000e+00> : vector<2x128xf32>
    %80 = tpu.matmul %74, %9, %cst_23 {dimension_numbers = #tpu.dot_dimension_numbers<[1], [0], [0], [1], [0, 0, 1, 1], [], []>} : vector<2x32xf32>, vector<32x128xf32>, vector<2x128xf32> -> vector<2x128xf32>
    %81 = arith.addf %79, %80 : vector<2x128xf32>
    %82 = arith.negf %81 : vector<2x128xf32>
    %83 = math.exp %82 : vector<2x128xf32>
    %cst_24 = arith.constant 1.000000e+00 : f32
    %84 = vector.broadcast %cst_24 : f32 to vector<2x128xf32>
    %85 = arith.addf %84, %83 : vector<2x128xf32>
    %86 = arith.divf %84, %85 : vector<2x128xf32>
    %87 = math.tanh %81 : vector<2x128xf32>
    %88 = vector.extract_strided_slice %86 {offsets = [0, 0], sizes = [2, 32], strides = [1, 1]} : vector<2x128xf32> to vector<2x32xf32>
    %89 = vector.extract_strided_slice %86 {offsets = [0, 32], sizes = [2, 32], strides = [1, 1]} : vector<2x128xf32> to vector<2x32xf32>
    %90 = vector.extract_strided_slice %87 {offsets = [0, 64], sizes = [2, 32], strides = [1, 1]} : vector<2x128xf32> to vector<2x32xf32>
    %91 = vector.extract_strided_slice %86 {offsets = [0, 96], sizes = [2, 32], strides = [1, 1]} : vector<2x128xf32> to vector<2x32xf32>
    %92 = arith.mulf %89, %72 : vector<2x32xf32>
    %93 = arith.mulf %88, %90 : vector<2x32xf32>
    %94 = arith.addf %92, %93 : vector<2x32xf32>
    %95 = math.tanh %94 : vector<2x32xf32>
    %96 = arith.mulf %91, %95 : vector<2x32xf32>
    %c0_25 = arith.constant 0 : index
    %c3 = arith.constant 3 : index
    %c0_26 = arith.constant 0 : index
    %97 = vector.load %arg4[%c0_25, %c3, %c0_26] : memref<2x8x32xf32, #tpu.memory_space<vmem>>, vector<2x1x32xf32>
    %98 = vector.shape_cast %97 : vector<2x1x32xf32> to vector<2x32xf32>
    %99 = vector.shape_cast %96 : vector<2x32xf32> to vector<2x1x32xf32>
    tpu.vector_store %arg4[%c0_25, %c3, %c0_26], %99 {strides = array<i32>} : memref<2x8x32xf32, #tpu.memory_space<vmem>>, vector<2x1x32xf32>,
    %100 = vector.extract_strided_slice %8 {offsets = [4, 0, 0], sizes = [1, 2, 128], strides = [1, 1, 1]} : vector<8x2x128xf32> to vector<1x2x128xf32>
    %101 = vector.shape_cast %100 : vector<1x2x128xf32> to vector<2x128xf32>
    %cst_27 = arith.constant dense<0.000000e+00> : vector<2x128xf32>
    %102 = tpu.matmul %96, %9, %cst_27 {dimension_numbers = #tpu.dot_dimension_numbers<[1], [0], [0], [1], [0, 0, 1, 1], [], []>} : vector<2x32xf32>, vector<32x128xf32>, vector<2x128xf32> -> vector<2x128xf32>
    %103 = arith.addf %101, %102 : vector<2x128xf32>
    %104 = arith.negf %103 : vector<2x128xf32>
    %105 = math.exp %104 : vector<2x128xf32>
    %cst_28 = arith.constant 1.000000e+00 : f32
    %106 = vector.broadcast %cst_28 : f32 to vector<2x128xf32>
    %107 = arith.addf %106, %105 : vector<2x128xf32>
    %108 = arith.divf %106, %107 : vector<2x128xf32>
    %109 = math.tanh %103 : vector<2x128xf32>
    %110 = vector.extract_strided_slice %108 {offsets = [0, 0], sizes = [2, 32], strides = [1, 1]} : vector<2x128xf32> to vector<2x32xf32>
    %111 = vector.extract_strided_slice %108 {offsets = [0, 32], sizes = [2, 32], strides = [1, 1]} : vector<2x128xf32> to vector<2x32xf32>
    %112 = vector.extract_strided_slice %109 {offsets = [0, 64], sizes = [2, 32], strides = [1, 1]} : vector<2x128xf32> to vector<2x32xf32>
    %113 = vector.extract_strided_slice %108 {offsets = [0, 96], sizes = [2, 32], strides = [1, 1]} : vector<2x128xf32> to vector<2x32xf32>
    %114 = arith.mulf %111, %94 : vector<2x32xf32>
    %115 = arith.mulf %110, %112 : vector<2x32xf32>
    %116 = arith.addf %114, %115 : vector<2x32xf32>
    %117 = math.tanh %116 : vector<2x32xf32>
    %118 = arith.mulf %113, %117 : vector<2x32xf32>
    %c0_29 = arith.constant 0 : index
    %c4 = arith.constant 4 : index
    %c0_30 = arith.constant 0 : index
    %119 = vector.load %arg4[%c0_29, %c4, %c0_30] : memref<2x8x32xf32, #tpu.memory_space<vmem>>, vector<2x1x32xf32>
    %120 = vector.shape_cast %119 : vector<2x1x32xf32> to vector<2x32xf32>
    %121 = vector.shape_cast %118 : vector<2x32xf32> to vector<2x1x32xf32>
    tpu.vector_store %arg4[%c0_29, %c4, %c0_30], %121 {strides = array<i32>} : memref<2x8x32xf32, #tpu.memory_space<vmem>>, vector<2x1x32xf32>,
    %122 = vector.extract_strided_slice %8 {offsets = [5, 0, 0], sizes = [1, 2, 128], strides = [1, 1, 1]} : vector<8x2x128xf32> to vector<1x2x128xf32>
    %123 = vector.shape_cast %122 : vector<1x2x128xf32> to vector<2x128xf32>
    %cst_31 = arith.constant dense<0.000000e+00> : vector<2x128xf32>
    %124 = tpu.matmul %118, %9, %cst_31 {dimension_numbers = #tpu.dot_dimension_numbers<[1], [0], [0], [1], [0, 0, 1, 1], [], []>} : vector<2x32xf32>, vector<32x128xf32>, vector<2x128xf32> -> vector<2x128xf32>
    %125 = arith.addf %123, %124 : vector<2x128xf32>
    %126 = arith.negf %125 : vector<2x128xf32>
    %127 = math.exp %126 : vector<2x128xf32>
    %cst_32 = arith.constant 1.000000e+00 : f32
    %128 = vector.broadcast %cst_32 : f32 to vector<2x128xf32>
    %129 = arith.addf %128, %127 : vector<2x128xf32>
    %130 = arith.divf %128, %129 : vector<2x128xf32>
    %131 = math.tanh %125 : vector<2x128xf32>
    %132 = vector.extract_strided_slice %130 {offsets = [0, 0], sizes = [2, 32], strides = [1, 1]} : vector<2x128xf32> to vector<2x32xf32>
    %133 = vector.extract_strided_slice %130 {offsets = [0, 32], sizes = [2, 32], strides = [1, 1]} : vector<2x128xf32> to vector<2x32xf32>
    %134 = vector.extract_strided_slice %131 {offsets = [0, 64], sizes = [2, 32], strides = [1, 1]} : vector<2x128xf32> to vector<2x32xf32>
    %135 = vector.extract_strided_slice %130 {offsets = [0, 96], sizes = [2, 32], strides = [1, 1]} : vector<2x128xf32> to vector<2x32xf32>
    %136 = arith.mulf %133, %116 : vector<2x32xf32>
    %137 = arith.mulf %132, %134 : vector<2x32xf32>
    %138 = arith.addf %136, %137 : vector<2x32xf32>
    %139 = math.tanh %138 : vector<2x32xf32>
    %140 = arith.mulf %135, %139 : vector<2x32xf32>
    %c0_33 = arith.constant 0 : index
    %c5 = arith.constant 5 : index
    %c0_34 = arith.constant 0 : index
    %141 = vector.load %arg4[%c0_33, %c5, %c0_34] : memref<2x8x32xf32, #tpu.memory_space<vmem>>, vector<2x1x32xf32>
    %142 = vector.shape_cast %141 : vector<2x1x32xf32> to vector<2x32xf32>
    %143 = vector.shape_cast %140 : vector<2x32xf32> to vector<2x1x32xf32>
    tpu.vector_store %arg4[%c0_33, %c5, %c0_34], %143 {strides = array<i32>} : memref<2x8x32xf32, #tpu.memory_space<vmem>>, vector<2x1x32xf32>,
    %144 = vector.extract_strided_slice %8 {offsets = [6, 0, 0], sizes = [1, 2, 128], strides = [1, 1, 1]} : vector<8x2x128xf32> to vector<1x2x128xf32>
    %145 = vector.shape_cast %144 : vector<1x2x128xf32> to vector<2x128xf32>
    %cst_35 = arith.constant dense<0.000000e+00> : vector<2x128xf32>
    %146 = tpu.matmul %140, %9, %cst_35 {dimension_numbers = #tpu.dot_dimension_numbers<[1], [0], [0], [1], [0, 0, 1, 1], [], []>} : vector<2x32xf32>, vector<32x128xf32>, vector<2x128xf32> -> vector<2x128xf32>
    %147 = arith.addf %145, %146 : vector<2x128xf32>
    %148 = arith.negf %147 : vector<2x128xf32>
    %149 = math.exp %148 : vector<2x128xf32>
    %cst_36 = arith.constant 1.000000e+00 : f32
    %150 = vector.broadcast %cst_36 : f32 to vector<2x128xf32>
    %151 = arith.addf %150, %149 : vector<2x128xf32>
    %152 = arith.divf %150, %151 : vector<2x128xf32>
    %153 = math.tanh %147 : vector<2x128xf32>
    %154 = vector.extract_strided_slice %152 {offsets = [0, 0], sizes = [2, 32], strides = [1, 1]} : vector<2x128xf32> to vector<2x32xf32>
    %155 = vector.extract_strided_slice %152 {offsets = [0, 32], sizes = [2, 32], strides = [1, 1]} : vector<2x128xf32> to vector<2x32xf32>
    %156 = vector.extract_strided_slice %153 {offsets = [0, 64], sizes = [2, 32], strides = [1, 1]} : vector<2x128xf32> to vector<2x32xf32>
    %157 = vector.extract_strided_slice %152 {offsets = [0, 96], sizes = [2, 32], strides = [1, 1]} : vector<2x128xf32> to vector<2x32xf32>
    %158 = arith.mulf %155, %138 : vector<2x32xf32>
    %159 = arith.mulf %154, %156 : vector<2x32xf32>
    %160 = arith.addf %158, %159 : vector<2x32xf32>
    %161 = math.tanh %160 : vector<2x32xf32>
    %162 = arith.mulf %157, %161 : vector<2x32xf32>
    %c0_37 = arith.constant 0 : index
    %c6 = arith.constant 6 : index
    %c0_38 = arith.constant 0 : index
    %163 = vector.load %arg4[%c0_37, %c6, %c0_38] : memref<2x8x32xf32, #tpu.memory_space<vmem>>, vector<2x1x32xf32>
    %164 = vector.shape_cast %163 : vector<2x1x32xf32> to vector<2x32xf32>
    %165 = vector.shape_cast %162 : vector<2x32xf32> to vector<2x1x32xf32>
    tpu.vector_store %arg4[%c0_37, %c6, %c0_38], %165 {strides = array<i32>} : memref<2x8x32xf32, #tpu.memory_space<vmem>>, vector<2x1x32xf32>,
    %166 = vector.extract_strided_slice %8 {offsets = [7, 0, 0], sizes = [1, 2, 128], strides = [1, 1, 1]} : vector<8x2x128xf32> to vector<1x2x128xf32>
    %167 = vector.shape_cast %166 : vector<1x2x128xf32> to vector<2x128xf32>
    %cst_39 = arith.constant dense<0.000000e+00> : vector<2x128xf32>
    %168 = tpu.matmul %162, %9, %cst_39 {dimension_numbers = #tpu.dot_dimension_numbers<[1], [0], [0], [1], [0, 0, 1, 1], [], []>} : vector<2x32xf32>, vector<32x128xf32>, vector<2x128xf32> -> vector<2x128xf32>
    %169 = arith.addf %167, %168 : vector<2x128xf32>
    %170 = arith.negf %169 : vector<2x128xf32>
    %171 = math.exp %170 : vector<2x128xf32>
    %cst_40 = arith.constant 1.000000e+00 : f32
    %172 = vector.broadcast %cst_40 : f32 to vector<2x128xf32>
    %173 = arith.addf %172, %171 : vector<2x128xf32>
    %174 = arith.divf %172, %173 : vector<2x128xf32>
    %175 = math.tanh %169 : vector<2x128xf32>
    %176 = vector.extract_strided_slice %174 {offsets = [0, 0], sizes = [2, 32], strides = [1, 1]} : vector<2x128xf32> to vector<2x32xf32>
    %177 = vector.extract_strided_slice %174 {offsets = [0, 32], sizes = [2, 32], strides = [1, 1]} : vector<2x128xf32> to vector<2x32xf32>
    %178 = vector.extract_strided_slice %175 {offsets = [0, 64], sizes = [2, 32], strides = [1, 1]} : vector<2x128xf32> to vector<2x32xf32>
    %179 = vector.extract_strided_slice %174 {offsets = [0, 96], sizes = [2, 32], strides = [1, 1]} : vector<2x128xf32> to vector<2x32xf32>
    %180 = arith.mulf %177, %160 : vector<2x32xf32>
    %181 = arith.mulf %176, %178 : vector<2x32xf32>
    %182 = arith.addf %180, %181 : vector<2x32xf32>
    %183 = math.tanh %182 : vector<2x32xf32>
    %184 = arith.mulf %179, %183 : vector<2x32xf32>
    %c0_41 = arith.constant 0 : index
    %c7 = arith.constant 7 : index
    %c0_42 = arith.constant 0 : index
    %185 = vector.load %arg4[%c0_41, %c7, %c0_42] : memref<2x8x32xf32, #tpu.memory_space<vmem>>, vector<2x1x32xf32>
    %186 = vector.shape_cast %185 : vector<2x1x32xf32> to vector<2x32xf32>
    %187 = vector.shape_cast %184 : vector<2x32xf32> to vector<2x1x32xf32>
    tpu.vector_store %arg4[%c0_41, %c7, %c0_42], %187 {strides = array<i32>} : memref<2x8x32xf32, #tpu.memory_space<vmem>>, vector<2x1x32xf32>,
    return
  }
}

</mosaic_0001>

<bundles_post_ra>
// kernel: tpu_custom_call.1
= control target key start
LH: loop header
LB: loop body
LE: loop exit
PB: predicated region body
PF: predicated region fallthrough
CT: control target
= control target key end

     0   :  { %9 = vsyncpa [#allocation3], 0  ;;  %s1476_s0 = inlined_call_operand.hbm [shape: f32[2,8,32], index: 0, kind: input, shape index: {}]   ;;  %s1477_s1 = inlined_call_operand.hbm [shape: f32[32,128], index: 1, kind: input, shape index: {}]   ;;  %s1478_s2 = inlined_call_operand.hbm [shape: f32[32,128], index: 2, kind: input, shape index: {}]   ;;  %s1479_s3 = inlined_call_operand.vmem [shape: f32[1,128], index: 3, kind: input, shape index: {}]   ;;  %s1480_s4 = inlined_call_operand.hbm [shape: f32[2,8,32], index: 4, kind: output, shape index: {}]  }
   0x1   :  { %10 = vsyncpa [#allocation6], 0 }
   0x2   :  { %11 = vsyncpa [#allocation4], 0  ;;  %s29_s17 = sshll.u32 %s1477_s1, 4  ;;  %s1098_s18 = smov [#allocation5]   ;;  %s30_s17 = int_to_ptr.hbm [resolvable:$true] %s29_s17 }
   0x3   :  { %s31_s19 = sshll.u32 %s1098_s18, 4  ;;  %s16_s22 = sshll.u32 %s1476_s0, 4  ;;  %s32_s19 = int_to_ptr.vmem [resolvable:$true] %s31_s19  ;;  %s17_s22 = int_to_ptr.hbm [resolvable:$true] %s16_s22 }
   0x4   :  { %s1099_s23 = smov 128   ;;  %s1100_s24 = smov 8  }
   0x5   :  { %37 = dma.hbm_to_vmem [thread:$0]  %s30_s17, 512, %s32_s19, [#allocation6], %s1099_s23, %s1099_s23, %s1100_s24  }
   0x6   :  { %s1101_s25 = smov [#allocation2]   ;;  %s42_s1 = sshll.u32 %s1478_s2, 4  ;;  %s43_s1 = int_to_ptr.hbm [resolvable:$true] %s42_s1 }
   0x7   :  { %s18_s26 = sshll.u32 %s1101_s25, 4  ;;  %s1102_s0 = smov [#allocation7]   ;;  %s19_s26 = int_to_ptr.vmem [resolvable:$true] %s18_s26 }
   0x8   :  { %24 = dma.hbm_to_vmem [thread:$0]  %s17_s22, 256, %s19_s26, [#allocation3], %s1099_s23, %s1099_s23, %s1100_s24  }
   0x9   :  { %s44_s29 = sshll.u32 %s1102_s0, 4  ;;  %s45_s29 = int_to_ptr.vmem [resolvable:$true] %s44_s29 }
   0xa   :  { %50 = dma.hbm_to_vmem [thread:$0]  %s43_s1, 512, %s45_s29, [#allocation6], %s1099_s23, %s1099_s23, %s1100_s24  }
   0xb   :  { %1092 = dma.done.wait [#allocation3], 256  }
   0xc   :  { %1093 = vsyncadd [#allocation3], 4294967040 }
   0xd   :  { %1094 = dma.done.wait [#allocation6], 1024  }
   0xe   :  { %1095 = vsyncadd [#allocation6], 4294966272  ;;  %v1103_v0 = vmov 1983009808   ;;  %v123_v3 = vld [vmem:[#allocation5 + $0x18] sm:$0xff]  ;;  %v122_v4 = vld [vmem:[#allocation5 + $0x10] sm:$0xff] }
   0xf   :  { %v71_v1 = vunpack.c.l.s4 %v1103_v0  ;;  %v198_v5 = vld [vmem:[#allocation7 + $0x18] sm:$0xff]  ;;  %v1104_v6 = vmov 1934713408   ;;  %170 = vmatpush.msra.mxu0 %v123_v3  ;;  %v121_v8 = vld [vmem:[#allocation5 + $0x8] sm:$0xff]  ;;  %v197_v9 = vld [vmem:[#allocation7 + $0x10] sm:$0xff]  ;;  %vm68_vm0 = vcmask 1047556  }
  0x10   :  { %v93_v7 = vunpack.c.l.s4 %v1104_v6  ;;  %214 = vmatpush.msra.mxu1 %v198_v5  ;;  %v196_v10 = vld [vmem:[#allocation7 + $0x8] sm:$0xff]  ;;  %v1154_v11 = vld [vmem:[#allocation2] sm:$0xff]  ;;  %v1156_v12 = vld [vmem:[#allocation2 + $0x8] sm:$0xff]  ;;  %306 = vmatpush.msra.mxu2 %v198_v5  ;;  %v1105_v24 = vmov 0.0   ;;  %vm153_vm1 = vcmask 261120   ;;  %s1106_s5 = smov 64  }
  0x11   :  { %v1152_v2 = vunpack.c.0.s8 %v71_v1  ;;  %391 = vmatpush.msra.mxu3 %v198_v5  ;;  %171 = vmatpush.msra.mxu0 %v122_v4  ;;  %v120_v15 = vld [vmem:[#allocation5] sm:$0xff]  ;;  %v1174_v30 = vld [vmem:[%s1479_s3] ss:$0 sm:$0xff]  ;;  %s1107_s3 = smov 32   ;;  %vm270_vm6 = vcmask 1041409   ;;  %vm272_vm7 = vcmask 1043459  }
  0x12   :  { %215 = vmatpush.msra.mxu1 %v197_v9  ;;  %v1162_v16 = vunpack.c.0.s8 %v93_v7  ;;  %v195_v17 = vld [vmem:[#allocation7] sm:$0xff]  ;;  %307 = vmatpush.msra.mxu2 %v197_v9  ;;  %vm274_vm8 = vcmask 1042433   ;;  %vm264_vm13 = vcmask 1040384   ;;  %vm266_vm14 = vcmask 1042434   ;;  %s1108_s6 = smov [#allocation8]   ;;  %s889_s10 = sshll.u32 %s1480_s4, 4  ;;  %s890_s10 = int_to_ptr.hbm [resolvable:$true] %s889_s10 }
  0x13   :  { %v73_v13 = vperm.slane %v1154_v11, %v1152_v2  ;;  %v83_v14 = vperm.slane %v1156_v12, %v1152_v2  ;;  %392 = vmatpush.msra.mxu3 %v197_v9  ;;  %172 = vmatpush.msra.mxu0 %v121_v8  ;;  %vm268_vm15 = vcmask 1041408   ;;  %s887_s7 = sshll.u32 %s1108_s6, 4  ;;  %s888_s7 = int_to_ptr.vmem [resolvable:$true] %s887_s7 }
  0x14   :  { %216 = vmatpush.msra.mxu1 %v196_v10  ;;  %308 = vmatpush.msra.mxu2 %v196_v10 }
  0x15   :  { %v88_v18 = vrot.slane %v83_v14, 4  ;;  %v90_v19 = vrot.slane %v73_v13, 4  ;;  %393 = vmatpush.msra.mxu3 %v196_v10  ;;  %173 = vmatpush.msra.mxu0 %v120_v15 }
  0x16   :  { %217 = vmatpush.msra.mxu1 %v195_v17  ;;  %309 = vmatpush.msra.mxu2 %v195_v17 }
  0x17   :  { %v89_v20 = vsel %vm68_vm0, %v88_v18, %v73_v13  ;;  %v91_v21 = vsel %vm68_vm0, %v83_v14, %v90_v19  ;;  %218 = vmatmul.f32.vlgmr.msra.gmra.mxu1 %v1105_v24  ;;  %394 = vmatpush.msra.mxu3 %v195_v17 }
  0x18   :  { %v95_v22 = vperm.slane %v89_v20, %v1162_v16  ;;  %v99_v23 = vperm.slane %v91_v21, %v1162_v16  ;;  %476 = vmatpush.msrb.mxu1 %v198_v5  ;;  %561 = vmatpush.msrb.mxu2 %v198_v5 }
  0x19   :  { %646 = vmatpush.msrb.mxu3 %v198_v5  ;;  %731 = vmatpush.msrb.mxu0 %v198_v5 }
  0x1a   :  { %v112_v25 = vrot.slane %v95_v22, 4  ;;  %v114_v26 = vrot.slane %v99_v23, 4  ;;  %136 = vst [vmem:[#allocation1] ss:$4 sm:$0xff] %v95_v22  ;;  %477 = vmatpush.msrb.mxu1 %v197_v9  ;;  %562 = vmatpush.msrb.mxu2 %v197_v9 }
  0x1b   :  { %140 = vst [vmem:[#allocation1 + $0x2] ss:$4 sm:$0xff] %v99_v23  ;;  %647 = vmatpush.msrb.mxu3 %v197_v9  ;;  %732 = vmatpush.msrb.mxu0 %v197_v9 }
  0x1c   :  { %v113_v27 = vsel %vm68_vm0, 0.0, %v112_v25  ;;  %v115_v28 = vsel %vm68_vm0, 0.0, %v114_v26  ;;  %478 = vmatpush.msrb.mxu1 %v196_v10  ;;  %563 = vmatpush.msrb.mxu2 %v196_v10 }
  0x1d   :  { %138 = vst [vmem:[#allocation1 + $0x1] ss:$4 sm:$0xff] %v113_v27  ;;  %648 = vmatpush.msrb.mxu3 %v196_v10  ;;  %733 = vmatpush.msrb.mxu0 %v196_v10 }
  0x1e   :  { %142 = vst [vmem:[#allocation1 + $0x3] ss:$4 sm:$0xff] %v115_v28  ;;  %479 = vmatpush.msrb.mxu1 %v195_v17  ;;  %564 = vmatpush.msrb.mxu2 %v195_v17 }
  0x1f   :  { %649 = vmatpush.msrb.mxu3 %v195_v17  ;;  %734 = vmatpush.msrb.mxu0 %v195_v17 }
  0x20   :  { %816 = vmatpush.msra.mxu1 %v198_v5 }
  0x22   :  { %817 = vmatpush.msra.mxu1 %v197_v9 }
  0x24   :  { %818 = vmatpush.msra.mxu1 %v196_v10 }
  0x25   :  { %v151_v29 = vld.sshfl [vmem:[#allocation1] sm:$0xff pattern:$0x73625140] }
  0x26   :  { %903 = vmatmul.msk.f32.vlgmr.msra.gmra.mxu0 %vm153_vm1, %v151_v29  ;;  %819 = vmatpush.msra.mxu1 %v195_v17 }
  0x94   :  { %v219_v32 = vpop.f32.mrf.mxu1 }
  0xa3   :  { %v175_v31 = vpop.f32.mrf.mxu0 }
  0xa4   :  { %v1177_v33 = vadd.f32 %v1174_v30, %v175_v31 }
  0xa6   :  { %v222_v34 = vadd.f32 %v219_v32, %v1177_v33  ;;  %v183_v1 = vrot.slane %v1177_v33, 2 }
  0xa8   :  { %932 = vtanh.f32 %v222_v34  ;;  %v905_v36 = vmul.f32 -1.442695, %v222_v34 }
  0xaa   :  { %934 = vpow2.f32 %v905_v36 }
  0xae   :  { %v933_v35 = vpop.eup %932 }
  0xaf   :  { %245 = vrot.lane.b32.xlu0 %v933_v35, %s1106_s5 }
  0xb0   :  { %v935_v37 = vpop.eup %934 }
  0xb1   :  { %v226_v38 = vadd.f32 1.0, %v935_v37 }
  0xb3   :  { %936 = vrcp.f32 %v226_v38  ;;  %v238_v44 = vand.u32 2147483648, %v226_v38  ;;  %vm232_vm3 = vweird.f32 %v226_v38  ;;  %v236_v45 = vand.u32 2147483647, %v226_v38 }
  0xb5   :  { %v239_v47 = vor.u32 1.1754944e-38, %v238_v44  ;;  %vm237_vm5 = vcmp.eq.f32.partialorder %v236_v45, 8.507059e+37 }
  0xb9   :  { %v937_v39 = vpop.eup %936 }
  0xba   :  { %v228_v40 = vmul.f32 %v937_v39, %v226_v38  ;;  %vm233_vm2 = vweird.f32 %v937_v39 }
  0xbb   :  { %vm234_vm4 = vmor %vm232_vm3, %vm233_vm2 }
  0xbc   :  { %v229_v41 = vsub.f32 1.0, %v228_v40  ;;  %v184_v40 = vrot.slane %v1177_v33, 4 }
  0xbe   :  { %v230_v42 = vmul.f32 %v937_v39, %v229_v41 }
  0xc0   :  { %v231_v43 = vadd.f32 %v937_v39, %v230_v42 }
  0xc2   :  { %v235_v46 = vsel %vm234_vm4, %v937_v39, %v231_v43 }
  0xc3   :  { %v240_v49 = vsel %vm237_vm5, %v239_v47, %v235_v46 }
  0xc4   :  { %v243_v51 = vmul.f32 0.0, %v240_v49 }
 0x121   :  { %v246_v48 = vpop.permute.xlu0 %245 }
 0x122   :  { %v248_v50 = vmul.f32 %v246_v48, %v240_v49 }
 0x124   :  { %250 = vrot.lane.b32.xlu0 %v248_v50, %s1107_s3 }
 0x196   :  { %v251_v52 = vpop.permute.xlu0 %250 }
 0x197   :  { %v253_v53 = vadd.f32 %v251_v52, %v243_v51 }
 0x199   :  { %938 = vtanh.f32 %v253_v53 }
 0x19f   :  { %v939_v54 = vpop.eup %938 }
 0x1a0   :  { %256 = vrot.lane.b32.xlu1 %v939_v54, %s1106_s5 }
 0x212   :  { %v257_v55 = vpop.permute.xlu1 %256 }
 0x213   :  { %v1183_v56 = vmul.f32 %v257_v55, %v240_v49 }
 0x215   :  { %288 = vst [vmem:[#allocation1] ss:$4 sm:$0xff] %v1183_v56  ;;  %v261_v57 = vrot.slane %v1183_v56, 1  ;;  %v262_v58 = vrot.slane %v1183_v56, 2  ;;  %v263_v59 = vrot.slane %v1183_v56, 3 }
 0x217   :  { %v271_v60 = vsel %vm270_vm6, %v1183_v56, %v261_v57  ;;  %v273_v61 = vsel %vm272_vm7, %v262_v58, %v263_v59 }
 0x218   :  { %v1199_v62 = vsel %vm274_vm8, %v271_v60, %v273_v61 }
 0x21c   :  { %v289_v63 = vld.sshfl [vmem:[#allocation1] sm:$0xff pattern:$0x73625140] }
 0x21d   :  { %290 = vrot.lane.b32.xlu1 %v289_v63, %s1107_s3 }
 0x28f   :  { %v291_v0 = vpop.permute.xlu1 %290 }
 0x290   :  { %906 = vmatmul.msk.f32.vlgmr.msra.gmra.mxu2 %vm153_vm1, %v291_v0 }
 0x313   :  { %v311_v3 = vpop.f32.mrf.mxu2 }
 0x314   :  { %v314_v4 = vadd.f32 %v311_v3, %v183_v1 }
 0x316   :  { %940 = vtanh.f32 %v314_v4  ;;  %v907_v6 = vmul.f32 -1.442695, %v314_v4 }
 0x318   :  { %942 = vpow2.f32 %v907_v6 }
 0x31c   :  { %v941_v5 = vpop.eup %940 }
 0x31d   :  { %337 = vrot.lane.b32.xlu2 %v941_v5, %s1106_s5 }
 0x31e   :  { %v943_v7 = vpop.eup %942 }
 0x31f   :  { %v318_v8 = vadd.f32 1.0, %v943_v7 }
 0x321   :  { %944 = vrcp.f32 %v318_v8  ;;  %v330_v17 = vand.u32 2147483648, %v318_v8  ;;  %vm324_vm10 = vweird.f32 %v318_v8  ;;  %v328_v18 = vand.u32 2147483647, %v318_v8 }
 0x323   :  { %v331_v20 = vor.u32 1.1754944e-38, %v330_v17  ;;  %vm329_vm12 = vcmp.eq.f32.partialorder %v328_v18, 8.507059e+37  ;;  %v185_v18 = vrot.slane %v1177_v33, 6 }
 0x327   :  { %v945_v9 = vpop.eup %944 }
 0x328   :  { %v320_v10 = vmul.f32 %v945_v9, %v318_v8  ;;  %vm325_vm9 = vweird.f32 %v945_v9 }
 0x329   :  { %vm326_vm11 = vmor %vm324_vm10, %vm325_vm9 }
 0x32a   :  { %v321_v13 = vsub.f32 1.0, %v320_v10 }
 0x32c   :  { %v322_v14 = vmul.f32 %v945_v9, %v321_v13 }
 0x32e   :  { %v323_v15 = vadd.f32 %v945_v9, %v322_v14 }
 0x330   :  { %v327_v19 = vsel %vm326_vm11, %v945_v9, %v323_v15 }
 0x331   :  { %v332_v22 = vsel %vm329_vm12, %v331_v20, %v327_v19 }
 0x332   :  { %v335_v24 = vmul.f32 %v332_v22, %v253_v53 }
 0x377   :  { %v338_v21 = vpop.permute.xlu2 %337 }
 0x378   :  { %v340_v23 = vmul.f32 %v338_v21, %v332_v22 }
 0x37a   :  { %342 = vrot.lane.b32.xlu2 %v340_v23, %s1107_s3 }
 0x3d4   :  { %v343_v25 = vpop.permute.xlu2 %342 }
 0x3d5   :  { %v345_v26 = vadd.f32 %v343_v25, %v335_v24 }
 0x3d7   :  { %946 = vtanh.f32 %v345_v26 }
 0x3dd   :  { %v947_v27 = vpop.eup %946 }
 0x3de   :  { %348 = vrot.lane.b32.xlu0 %v947_v27, %s1106_s5 }
 0x450   :  { %v349_v28 = vpop.permute.xlu0 %348 }
 0x451   :  { %v1207_v29 = vmul.f32 %v349_v28, %v332_v22 }
 0x453   :  { %373 = vst [vmem:[#allocation1] ss:$4 sm:$0xff] %v1207_v29  ;;  %v353_v31 = vrot.slane %v1207_v29, 1  ;;  %v354_v32 = vrot.slane %v1207_v29, 2  ;;  %v355_v34 = vrot.slane %v1207_v29, 3 }
 0x455   :  { %v356_v35 = vsel %vm264_vm13, %v1207_v29, %v353_v31  ;;  %v357_v36 = vsel %vm266_vm14, %v354_v32, %v355_v34 }
 0x456   :  { %v1223_v37 = vsel %vm268_vm15, %v356_v35, %v357_v36 }
 0x45a   :  { %v374_v38 = vld.sshfl [vmem:[#allocation1] sm:$0xff pattern:$0x73625140] }
 0x45b   :  { %375 = vrot.lane.b32.xlu1 %v374_v38, %s1107_s3 }
 0x4cd   :  { %v376_v39 = vpop.permute.xlu1 %375 }
 0x4ce   :  { %908 = vmatmul.msk.f32.vlgmr.msra.gmra.mxu3 %vm153_vm1, %v376_v39 }
 0x551   :  { %v396_v41 = vpop.f32.mrf.mxu3 }
 0x552   :  { %v399_v42 = vadd.f32 %v396_v41, %v184_v40 }
 0x554   :  { %948 = vtanh.f32 %v399_v42  ;;  %v909_v44 = vmul.f32 -1.442695, %v399_v42 }
 0x556   :  { %950 = vpow2.f32 %v909_v44 }
 0x55a   :  { %v949_v43 = vpop.eup %948 }
 0x55b   :  { %422 = vrot.lane.b32.xlu2 %v949_v43, %s1106_s5 }
 0x55c   :  { %v951_v45 = vpop.eup %950 }
 0x55d   :  { %v403_v46 = vadd.f32 1.0, %v951_v45 }
 0x55f   :  { %952 = vrcp.f32 %v403_v46  ;;  %v415_v52 = vand.u32 2147483648, %v403_v46  ;;  %vm409_vm3 = vweird.f32 %v403_v46  ;;  %v413_v53 = vand.u32 2147483647, %v403_v46 }
 0x561   :  { %v416_v55 = vor.u32 1.1754944e-38, %v415_v52  ;;  %vm414_vm5 = vcmp.eq.f32.partialorder %v413_v53, 8.507059e+37 }
 0x565   :  { %v953_v47 = vpop.eup %952 }
 0x566   :  { %v405_v48 = vmul.f32 %v953_v47, %v403_v46  ;;  %vm410_vm2 = vweird.f32 %v953_v47 }
 0x567   :  { %vm411_vm4 = vmor %vm409_vm3, %vm410_vm2 }
 0x568   :  { %v406_v49 = vsub.f32 1.0, %v405_v48 }
 0x56a   :  { %v407_v50 = vmul.f32 %v953_v47, %v406_v49 }
 0x56c   :  { %v408_v51 = vadd.f32 %v953_v47, %v407_v50 }
 0x56e   :  { %v412_v54 = vsel %vm411_vm4, %v953_v47, %v408_v51 }
 0x56f   :  { %v417_v61 = vsel %vm414_vm5, %v416_v55, %v412_v54 }
 0x570   :  { %v420_v0 = vmul.f32 %v417_v61, %v345_v26 }
 0x5b5   :  { %v423_v60 = vpop.permute.xlu2 %422 }
 0x5b6   :  { %v425_v63 = vmul.f32 %v423_v60, %v417_v61  ;;  %v67_v60 = vrot.slane %v1154_v11, 4 }
 0x5b8   :  { %427 = vrot.lane.b32.xlu0 %v425_v63, %s1107_s3  ;;  %v69_v63 = vsel %vm68_vm0, 0.0, %v67_v60 }
 0x62a   :  { %v428_v1 = vpop.permute.xlu0 %427 }
 0x62b   :  { %v430_v3 = vadd.f32 %v428_v1, %v420_v0  ;;  %v77_v1 = vperm.slane %v69_v63, %v1152_v2 }
 0x62d   :  { %954 = vtanh.f32 %v430_v3 }
 0x633   :  { %v955_v4 = vpop.eup %954 }
 0x634   :  { %433 = vrot.lane.b32.xlu1 %v955_v4, %s1106_s5 }
 0x6a6   :  { %v434_v5 = vpop.permute.xlu1 %433 }
 0x6a7   :  { %v1231_v6 = vmul.f32 %v434_v5, %v417_v61  ;;  %v78_v61 = vrot.slane %v1156_v12, 4  ;;  %v102_v5 = vrot.slane %v77_v1, 4 }
 0x6a9   :  { %458 = vst [vmem:[#allocation1] ss:$4 sm:$0xff] %v1231_v6  ;;  %v438_v7 = vrot.slane %v1231_v6, 1  ;;  %v439_v8 = vrot.slane %v1231_v6, 2  ;;  %v440_v9 = vrot.slane %v1231_v6, 3  ;;  %v79_v0 = vsel %vm68_vm0, 0.0, %v78_v61 }
 0x6ab   :  { %v444_v10 = vsel %vm270_vm6, %v1231_v6, %v438_v7  ;;  %v445_v13 = vsel %vm272_vm7, %v439_v8, %v440_v9 }
 0x6ac   :  { %v1247_v14 = vsel %vm274_vm8, %v444_v10, %v445_v13 }
 0x6b0   :  { %v459_v15 = vld.sshfl [vmem:[#allocation1] sm:$0xff pattern:$0x73625140] }
 0x6b1   :  { %460 = vrot.lane.b32.xlu2 %v459_v15, %s1107_s3 }
 0x70b   :  { %v461_v17 = vpop.permute.xlu2 %460 }
 0x70c   :  { %910 = vmatmul.msk.f32.vlgmr.msrb.gmra.mxu1 %vm153_vm1, %v461_v17 }
 0x789   :  { %v481_v19 = vpop.f32.mrf.mxu1 }
 0x78a   :  { %v484_v20 = vadd.f32 %v481_v19, %v185_v18 }
 0x78c   :  { %956 = vtanh.f32 %v484_v20  ;;  %v911_v22 = vmul.f32 -1.442695, %v484_v20 }
 0x78e   :  { %958 = vpow2.f32 %v911_v22 }
 0x792   :  { %v957_v21 = vpop.eup %956 }
 0x793   :  { %507 = vrot.lane.b32.xlu0 %v957_v21, %s1106_s5 }
 0x794   :  { %v959_v23 = vpop.eup %958 }
 0x795   :  { %v488_v24 = vadd.f32 1.0, %v959_v23 }
 0x797   :  { %960 = vrcp.f32 %v488_v24  ;;  %v500_v36 = vand.u32 2147483648, %v488_v24  ;;  %vm494_vm10 = vweird.f32 %v488_v24  ;;  %v498_v33 = vand.u32 2147483647, %v488_v24 }
 0x799   :  { %v501_v39 = vor.u32 1.1754944e-38, %v500_v36  ;;  %vm499_vm12 = vcmp.eq.f32.partialorder %v498_v33, 8.507059e+37 }
 0x79d   :  { %v961_v25 = vpop.eup %960 }
 0x79e   :  { %v490_v26 = vmul.f32 %v961_v25, %v488_v24  ;;  %vm495_vm9 = vweird.f32 %v961_v25 }
 0x79f   :  { %vm496_vm11 = vmor %vm494_vm10, %vm495_vm9 }
 0x7a0   :  { %v491_v27 = vsub.f32 1.0, %v490_v26 }
 0x7a2   :  { %v492_v28 = vmul.f32 %v961_v25, %v491_v27 }
 0x7a4   :  { %v493_v35 = vadd.f32 %v961_v25, %v492_v28 }
 0x7a6   :  { %v497_v38 = vsel %vm496_vm11, %v961_v25, %v493_v35 }
 0x7a7   :  { %v502_v41 = vsel %vm499_vm12, %v501_v39, %v497_v38 }
 0x7a8   :  { %v505_v43 = vmul.f32 %v502_v41, %v430_v3  ;;  %v87_v3 = vperm.slane %v79_v0, %v1152_v2 }
 0x7aa   :  { %v100_v4 = vrot.slane %v87_v3, 4  ;;  %v103_v13 = vsel %vm68_vm0, %v87_v3, %v102_v5 }
 0x7ab   :  { %v111_v11 = vperm.slane %v103_v13, %v1162_v16 }
 0x7ac   :  { %v101_v10 = vsel %vm68_vm0, %v100_v4, %v77_v1 }
 0x7ad   :  { %v107_v15 = vperm.slane %v101_v10, %v1162_v16  ;;  %v118_v12 = vrot.slane %v111_v11, 4  ;;  %148 = vst [vmem:[#allocation1 + $0x22] ss:$4 sm:$0xff] %v111_v11 }
 0x7af   :  { %v116_v17 = vrot.slane %v107_v15, 4  ;;  %144 = vst [vmem:[#allocation1 + $0x20] ss:$4 sm:$0xff] %v107_v15  ;;  %v119_v19 = vsel %vm68_vm0, 0.0, %v118_v12 }
 0x7b0   :  { %150 = vst [vmem:[#allocation1 + $0x23] ss:$4 sm:$0xff] %v119_v19 }
 0x7b1   :  { %v117_v18 = vsel %vm68_vm0, 0.0, %v116_v17 }
 0x7b2   :  { %146 = vst [vmem:[#allocation1 + $0x21] ss:$4 sm:$0xff] %v117_v18 }
 0x7b9   :  { %v152_v2 = vld.sshfl [vmem:[#allocation1 + $0x20] sm:$0xff pattern:$0x73625140] }
 0x7ba   :  { %904 = vmatmul.msk.f32.gmra.mxu0 %vm153_vm1, %v152_v2 }
 0x805   :  { %v508_v40 = vpop.permute.xlu0 %507 }
 0x806   :  { %v510_v42 = vmul.f32 %v508_v40, %v502_v41 }
 0x808   :  { %512 = vrot.lane.b32.xlu1 %v510_v42, %s1107_s3 }
 0x837   :  { %v178_v21 = vpop.f32.mrf.mxu0 }
 0x838   :  { %v1292_v22 = vadd.f32 %v1174_v30, %v178_v21 }
 0x83a   :  { %v186_v10 = vrot.slane %v1292_v22, 2 }
 0x87a   :  { %v513_v44 = vpop.permute.xlu1 %512 }
 0x87b   :  { %v1254_v45 = vadd.f32 %v513_v44, %v505_v43 }
 0x87d   :  { %962 = vtanh.f32 %v1254_v45 }
 0x883   :  { %v963_v46 = vpop.eup %962 }
 0x884   :  { %518 = vrot.lane.b32.xlu2 %v963_v46, %s1106_s5 }
 0x8de   :  { %v519_v47 = vpop.permute.xlu2 %518 }
 0x8df   :  { %v1258_v48 = vmul.f32 %v519_v47, %v502_v41 }
 0x8e1   :  { %543 = vst [vmem:[#allocation1] ss:$4 sm:$0xff] %v1258_v48  ;;  %v523_v49 = vrot.slane %v1258_v48, 1  ;;  %v524_v50 = vrot.slane %v1258_v48, 2  ;;  %v525_v51 = vrot.slane %v1258_v48, 3 }
 0x8e3   :  { %v529_v52 = vsel %vm270_vm6, %v1258_v48, %v523_v49  ;;  %v530_v53 = vsel %vm272_vm7, %v524_v50, %v525_v51 }
 0x8e4   :  { %v1274_v54 = vsel %vm274_vm8, %v529_v52, %v530_v53 }
 0x8e8   :  { %v544_v55 = vld.sshfl [vmem:[#allocation1] sm:$0xff pattern:$0x73625140] }
 0x8e9   :  { %545 = vrot.lane.b32.xlu0 %v544_v55, %s1107_s3 }
 0x95b   :  { %v546_v20 = vpop.permute.xlu0 %545 }
 0x95c   :  { %912 = vmatmul.msk.f32.vlgmr.msrb.gmra.mxu2 %vm153_vm1, %v546_v20 }
 0x9df   :  { %v566_v16 = vpop.f32.mrf.mxu2 }
 0x9e0   :  { %v569_v23 = vadd.f32 %v566_v16, %v1292_v22 }
 0x9e2   :  { %964 = vtanh.f32 %v569_v23  ;;  %v913_v25 = vmul.f32 -1.442695, %v569_v23 }
 0x9e4   :  { %966 = vpow2.f32 %v913_v25 }
 0x9e8   :  { %v965_v24 = vpop.eup %964 }
 0x9e9   :  { %592 = vrot.lane.b32.xlu1 %v965_v24, %s1106_s5 }
 0x9ea   :  { %v967_v26 = vpop.eup %966 }
 0x9eb   :  { %v573_v27 = vadd.f32 1.0, %v967_v26 }
 0x9ed   :  { %968 = vrcp.f32 %v573_v27  ;;  %v585_v30 = vand.u32 2147483648, %v573_v27  ;;  %vm579_vm2 = vweird.f32 %v573_v27  ;;  %v583_v39 = vand.u32 2147483647, %v573_v27 }
 0x9ef   :  { %v586_v41 = vor.u32 1.1754944e-38, %v585_v30  ;;  %vm584_vm4 = vcmp.eq.f32.partialorder %v583_v39, 8.507059e+37 }
 0x9f3   :  { %v969_v28 = vpop.eup %968 }
 0x9f4   :  { %v575_v35 = vmul.f32 %v969_v28, %v573_v27  ;;  %vm580_vm0 = vweird.f32 %v969_v28 }
 0x9f5   :  { %vm581_vm3 = vmor %vm579_vm2, %vm580_vm0 }
 0x9f6   :  { %v576_v36 = vsub.f32 1.0, %v575_v35 }
 0x9f8   :  { %v577_v33 = vmul.f32 %v969_v28, %v576_v36 }
 0x9fa   :  { %v578_v38 = vadd.f32 %v969_v28, %v577_v33 }
 0x9fc   :  { %v582_v40 = vsel %vm581_vm3, %v969_v28, %v578_v38 }
 0x9fd   :  { %v587_v43 = vsel %vm584_vm4, %v586_v41, %v582_v40 }
 0x9fe   :  { %v590_v46 = vmul.f32 %v587_v43, %v1254_v45 }
 0xa5b   :  { %v593_v42 = vpop.permute.xlu1 %592 }
 0xa5c   :  { %v595_v44 = vmul.f32 %v593_v42, %v587_v43 }
 0xa5e   :  { %597 = vrot.lane.b32.xlu2 %v595_v44, %s1107_s3 }
 0xab8   :  { %v598_v47 = vpop.permute.xlu2 %597 }
 0xab9   :  { %v600_v52 = vadd.f32 %v598_v47, %v590_v46 }
 0xabb   :  { %970 = vtanh.f32 %v600_v52 }
 0xac1   :  { %v971_v53 = vpop.eup %970 }
 0xac2   :  { %603 = vrot.lane.b32.xlu0 %v971_v53, %s1106_s5 }
 0xb34   :  { %v604_v55 = vpop.permute.xlu0 %603 }
 0xb35   :  { %v1299_v60 = vmul.f32 %v604_v55, %v587_v43  ;;  %v187_v55 = vrot.slane %v1292_v22, 4 }
 0xb37   :  { %628 = vst [vmem:[#allocation1] ss:$4 sm:$0xff] %v1299_v60  ;;  %v608_v61 = vrot.slane %v1299_v60, 1  ;;  %v609_v63 = vrot.slane %v1299_v60, 2  ;;  %v610_v0 = vrot.slane %v1299_v60, 3 }
 0xb39   :  { %v611_v45 = vsel %vm264_vm13, %v1299_v60, %v608_v61  ;;  %v612_v1 = vsel %vm266_vm14, %v609_v63, %v610_v0 }
 0xb3a   :  { %v1315_v3 = vsel %vm268_vm15, %v611_v45, %v612_v1 }
 0xb3e   :  { %v629_v4 = vld.sshfl [vmem:[#allocation1] sm:$0xff pattern:$0x73625140] }
 0xb3f   :  { %630 = vrot.lane.b32.xlu1 %v629_v4, %s1107_s3 }
 0xbb1   :  { %v631_v5 = vpop.permute.xlu1 %630 }
 0xbb2   :  { %914 = vmatmul.msk.f32.vlgmr.msrb.gmra.mxu3 %vm153_vm1, %v631_v5 }
 0xc35   :  { %v651_v13 = vpop.f32.mrf.mxu3 }
 0xc36   :  { %v654_v15 = vadd.f32 %v651_v13, %v186_v10 }
 0xc38   :  { %972 = vtanh.f32 %v654_v15  ;;  %v915_v17 = vmul.f32 -1.442695, %v654_v15 }
 0xc3a   :  { %974 = vpow2.f32 %v915_v17 }
 0xc3e   :  { %v973_v11 = vpop.eup %972 }
 0xc3f   :  { %677 = vrot.lane.b32.xlu2 %v973_v11, %s1106_s5 }
 0xc40   :  { %v975_v12 = vpop.eup %974 }
 0xc41   :  { %v658_v18 = vadd.f32 1.0, %v975_v12 }
 0xc43   :  { %976 = vrcp.f32 %v658_v18  ;;  %v670_v23 = vand.u32 2147483648, %v658_v18  ;;  %vm664_vm9 = vweird.f32 %v658_v18  ;;  %v668_v24 = vand.u32 2147483647, %v658_v18 }
 0xc45   :  { %v671_v26 = vor.u32 1.1754944e-38, %v670_v23  ;;  %vm669_vm11 = vcmp.eq.f32.partialorder %v668_v24, 8.507059e+37 }
 0xc49   :  { %v977_v19 = vpop.eup %976 }
 0xc4a   :  { %v660_v2 = vmul.f32 %v977_v19, %v658_v18  ;;  %vm665_vm5 = vweird.f32 %v977_v19 }
 0xc4b   :  { %vm666_vm10 = vmor %vm664_vm9, %vm665_vm5 }
 0xc4c   :  { %v661_v20 = vsub.f32 1.0, %v660_v2 }
 0xc4e   :  { %v662_v21 = vmul.f32 %v977_v19, %v661_v20 }
 0xc50   :  { %v663_v16 = vadd.f32 %v977_v19, %v662_v21 }
 0xc52   :  { %v667_v25 = vsel %vm666_vm10, %v977_v19, %v663_v16  ;;  %vm285_vm10 = vcmask 253952  }
 0xc53   :  { %v672_v28 = vsel %vm669_vm11, %v671_v26, %v667_v25 }
 0xc54   :  { %v675_v36 = vmul.f32 %v672_v28, %v600_v52 }
 0xc99   :  { %v678_v27 = vpop.permute.xlu2 %677 }
 0xc9a   :  { %v680_v35 = vmul.f32 %v678_v27, %v672_v28 }
 0xc9c   :  { %682 = vrot.lane.b32.xlu0 %v680_v35, %s1107_s3 }
 0xd0e   :  { %v683_v33 = vpop.permute.xlu0 %682 }
 0xd0f   :  { %v685_v38 = vadd.f32 %v683_v33, %v675_v36 }
 0xd11   :  { %978 = vtanh.f32 %v685_v38 }
 0xd17   :  { %v979_v30 = vpop.eup %978 }
 0xd18   :  { %688 = vrot.lane.b32.xlu1 %v979_v30, %s1106_s5 }
 0xd8a   :  { %v689_v39 = vpop.permute.xlu1 %688 }
 0xd8b   :  { %v1323_v40 = vmul.f32 %v689_v39, %v672_v28 }
 0xd8d   :  { %713 = vst [vmem:[#allocation1] ss:$4 sm:$0xff] %v1323_v40  ;;  %v693_v41 = vrot.slane %v1323_v40, 1  ;;  %v694_v42 = vrot.slane %v1323_v40, 2  ;;  %v695_v43 = vrot.slane %v1323_v40, 3 }
 0xd8f   :  { %v699_v44 = vsel %vm270_vm6, %v1323_v40, %v693_v41  ;;  %v700_v46 = vsel %vm272_vm7, %v694_v42, %v695_v43 }
 0xd90   :  { %v1339_v47 = vsel %vm274_vm8, %v699_v44, %v700_v46 }
 0xd94   :  { %v714_v52 = vld.sshfl [vmem:[#allocation1] sm:$0xff pattern:$0x73625140] }
 0xd95   :  { %715 = vrot.lane.b32.xlu2 %v714_v52, %s1107_s3 }
 0xdef   :  { %v716_v53 = vpop.permute.xlu2 %715 }
 0xdf0   :  { %916 = vmatmul.msk.f32.vlgmr.msrb.gmra.mxu0 %vm153_vm1, %v716_v53 }
 0xe6d   :  { %v736_v45 = vpop.f32.mrf.mxu0 }
 0xe6e   :  { %v739_v1 = vadd.f32 %v736_v45, %v187_v55  ;;  %v188_v55 = vrot.slane %v1292_v22, 6  ;;  %v359_v22 = vsel %vm270_vm6, %v1207_v29, %v353_v31  ;;  %v527_v29 = vsel %vm266_vm14, %v524_v50, %v525_v51 }
 0xe70   :  { %980 = vtanh.f32 %v739_v1  ;;  %v917_v5 = vmul.f32 -1.442695, %v739_v1 }
 0xe72   :  { %982 = vpow2.f32 %v917_v5  ;;  %v265_v5 = vsel %vm264_vm13, %v1183_v56, %v261_v57 }
 0xe76   :  { %v981_v4 = vpop.eup %980 }
 0xe77   :  { %762 = vrot.lane.b32.xlu0 %v981_v4, %s1106_s5 }
 0xe78   :  { %v983_v10 = vpop.eup %982 }
 0xe79   :  { %v743_v13 = vadd.f32 1.0, %v983_v10  ;;  %v267_v10 = vsel %vm266_vm14, %v262_v58, %v263_v59  ;;  %v526_v59 = vsel %vm264_vm13, %v1258_v48, %v523_v49 }
 0xe7a   :  { %v528_v31 = vsel %vm268_vm15, %v526_v59, %v527_v29 }
 0xe7b   :  { %984 = vrcp.f32 %v743_v13  ;;  %v755_v19 = vand.u32 2147483648, %v743_v13  ;;  %vm749_vm0 = vweird.f32 %v743_v13  ;;  %v753_v2 = vand.u32 2147483647, %v743_v13 }
 0xe7c   :  { %v533_v49 = vperm.slane %v528_v31, 0 }
 0xe7d   :  { %v756_v21 = vor.u32 1.1754944e-38, %v755_v19  ;;  %vm754_vm3 = vcmp.eq.f32.partialorder %v753_v2, 8.507059e+37 }
 0xe81   :  { %v985_v15 = vpop.eup %984 }
 0xe82   :  { %v745_v11 = vmul.f32 %v985_v15, %v743_v13  ;;  %vm750_vm12 = vweird.f32 %v985_v15  ;;  %v269_v13 = vsel %vm268_vm15, %v265_v5, %v267_v10 }
 0xe83   :  { %vm751_vm2 = vmor %vm749_vm0, %vm750_vm12  ;;  %v277_v57 = vperm.slane %v269_v13, 0 }
 0xe84   :  { %v746_v17 = vsub.f32 1.0, %v745_v11 }
 0xe86   :  { %v747_v12 = vmul.f32 %v985_v15, %v746_v17 }
 0xe88   :  { %v748_v18 = vadd.f32 %v985_v15, %v747_v12 }
 0xe8a   :  { %v752_v20 = vsel %vm751_vm2, %v985_v15, %v748_v18  ;;  %v360_v15 = vsel %vm272_vm7, %v354_v32, %v355_v34  ;;  %v614_v32 = vsel %vm270_vm6, %v1299_v60, %v608_v61  ;;  %v615_v34 = vsel %vm272_vm7, %v609_v63, %v610_v0 }
 0xe8b   :  { %v757_v23 = vsel %vm754_vm3, %v756_v21, %v752_v20  ;;  %v361_v11 = vsel %vm274_vm8, %v359_v22, %v360_v15  ;;  %v616_v17 = vsel %vm274_vm8, %v614_v32, %v615_v34  ;;  %v447_v15 = vrot.slane %v1247_v14, 1 }
 0xe8c   :  { %v760_v25 = vmul.f32 %v757_v23, %v685_v38  ;;  %v362_v56 = vrot.slane %v361_v11, 1  ;;  %v617_v48 = vrot.slane %v616_v17, 1 }
 0xe8e   :  { %v364_v58 = vperm.slane %v362_v56, 0  ;;  %v619_v50 = vperm.slane %v617_v48, 0  ;;  %v618_v56 = vperm.slane %v1315_v3, 0 }
 0xee9   :  { %v763_v16 = vpop.permute.xlu0 %762 }
 0xeea   :  { %v765_v24 = vmul.f32 %v763_v16, %v757_v23 }
 0xeec   :  { %767 = vrot.lane.b32.xlu1 %v765_v24, %s1107_s3 }
 0xf5e   :  { %v768_v26 = vpop.permute.xlu1 %767 }
 0xf5f   :  { %v1346_v27 = vadd.f32 %v768_v26, %v760_v25 }
 0xf61   :  { %986 = vtanh.f32 %v1346_v27 }
 0xf67   :  { %v987_v28 = vpop.eup %986 }
 0xf68   :  { %773 = vrot.lane.b32.xlu2 %v987_v28, %s1106_s5 }
 0xfc2   :  { %v774_v35 = vpop.permute.xlu2 %773 }
 0xfc3   :  { %v776_v36 = vmul.f32 %v774_v35, %v757_v23 }
 0xfc5   :  { %798 = vst [vmem:[#allocation1] ss:$4 sm:$0xff] %v776_v36  ;;  %v778_v33 = vrot.slane %v776_v36, 1  ;;  %v779_v30 = vrot.slane %v776_v36, 2  ;;  %v780_v39 = vrot.slane %v776_v36, 3 }
 0xfc7   :  { %v784_v44 = vsel %vm270_vm6, %v776_v36, %v778_v33  ;;  %v785_v46 = vsel %vm272_vm7, %v779_v30, %v780_v39  ;;  %v781_v51 = vsel %vm264_vm13, %v776_v36, %v778_v33  ;;  %v782_v12 = vsel %vm266_vm14, %v779_v30, %v780_v39 }
 0xfc8   :  { %v1353_v38 = vsel %vm274_vm8, %v784_v44, %v785_v46  ;;  %v783_v61 = vsel %vm268_vm15, %v781_v51, %v782_v12  ;;  %v276_v33 = vrot.slane %v1199_v62, 1  ;;  %v441_v44 = vsel %vm264_vm13, %v1231_v6, %v438_v7 }
 0xfc9   :  { %v788_v18 = vperm.slane %v783_v61, 0  ;;  %v442_v46 = vsel %vm266_vm14, %v439_v8, %v440_v9  ;;  %v696_v6 = vsel %vm264_vm13, %v1323_v40, %v693_v41  ;;  %v697_v8 = vsel %vm266_vm14, %v694_v42, %v695_v43 }
 0xfca   :  { %v278_v39 = vperm.slane %v276_v33, 0  ;;  %v443_v62 = vsel %vm268_vm15, %v441_v44, %v442_v46  ;;  %v698_v9 = vsel %vm268_vm15, %v696_v6, %v697_v8 }
 0xfcc   :  { %v799_v52 = vld.sshfl [vmem:[#allocation1] sm:$0xff pattern:$0x73625140] }
 0xfcd   :  { %800 = vrot.lane.b32.xlu0 %v799_v52, %s1107_s3 }
0x103f   :  { %v801_v53 = vpop.permute.xlu0 %800 }
0x1040   :  { %918 = vmatmul.msk.f32.vlgmr.msra.gmra.mxu1 %vm153_vm1, %v801_v53  ;;  %v448_v53 = vperm.slane %v443_v62, 0 }
0x10bd   :  { %v821_v45 = vpop.f32.mrf.mxu1 }
0x10be   :  { %v824_v1 = vadd.f32 %v821_v45, %v188_v55  ;;  %v532_v55 = vrot.slane %v1274_v54, 1 }
0x10c0   :  { %988 = vtanh.f32 %v824_v1  ;;  %v919_v60 = vmul.f32 -1.442695, %v824_v1  ;;  %v534_v7 = vperm.slane %v532_v55, 0  ;;  %v703_v1 = vperm.slane %v698_v9, 0 }
0x10c2   :  { %990 = vpow2.f32 %v919_v60 }
0x10c6   :  { %v989_v4 = vpop.eup %988 }
0x10c7   :  { %847 = vrot.lane.b32.xlu1 %v989_v4, %s1106_s5  ;;  %v787_v4 = vrot.slane %v1353_v38, 1  ;;  %v363_v38 = vperm.slane %v1223_v37, 0  ;;  %v702_v37 = vrot.slane %v1339_v47, 1 }
0x10c8   :  { %v991_v63 = vpop.eup %990 }
0x10c9   :  { %v828_v0 = vadd.f32 1.0, %v991_v63  ;;  %v789_v41 = vperm.slane %v787_v4, 0  ;;  %v704_v59 = vperm.slane %v702_v37, 0 }
0x10cb   :  { %992 = vrcp.f32 %v828_v0  ;;  %v840_v23 = vand.u32 2147483648, %v828_v0  ;;  %vm834_vm4 = vweird.f32 %v828_v0  ;;  %v838_v24 = vand.u32 2147483647, %v828_v0 }
0x10cd   :  { %v841_v26 = vor.u32 1.1754944e-38, %v840_v23  ;;  %vm839_vm9 = vcmp.eq.f32.partialorder %v838_v24, 8.507059e+37 }
0x10cf   :  { %279 = vrot.lane.b32.xlu1 %v277_v57, %s1107_s3 }
0x10d1   :  { %v993_v19 = vpop.eup %992 }
0x10d2   :  { %v830_v2 = vmul.f32 %v993_v19, %v828_v0  ;;  %vm835_vm1 = vweird.f32 %v993_v19 }
0x10d3   :  { %vm836_vm5 = vmor %vm834_vm4, %vm835_vm1 }
0x10d4   :  { %v831_v20 = vsub.f32 1.0, %v830_v2 }
0x10d6   :  { %v832_v21 = vmul.f32 %v993_v19, %v831_v20 }
0x10d7   :  { %367 = vrot.lane.b32.xlu1 %v364_v58, %s1107_s3 }
0x10d8   :  { %v833_v16 = vadd.f32 %v993_v19, %v832_v21 }
0x10da   :  { %v837_v25 = vsel %vm836_vm5, %v993_v19, %v833_v16 }
0x10db   :  { %v842_v35 = vsel %vm839_vm9, %v841_v26, %v837_v25 }
0x10dc   :  { %v845_v40 = vmul.f32 %v842_v35, %v1346_v27  ;;  %v449_v27 = vperm.slane %v447_v15, 0 }
0x10df   :  { %535 = vrot.lane.b32.xlu1 %v533_v49, %s1107_s3 }
0x10e7   :  { %622 = vrot.lane.b32.xlu1 %v619_v50, %s1107_s3 }
0x10ef   :  { %790 = vrot.lane.b32.xlu1 %v788_v18, %s1107_s3 }
0x1139   :  { %v848_v28 = vpop.permute.xlu1 %847 }
0x113a   :  { %v850_v36 = vmul.f32 %v848_v28, %v842_v35 }
0x113c   :  { %852 = vrot.lane.b32.xlu2 %v850_v36, %s1107_s3 }
0x1141   :  { %v280_v30 = vpop.permute.xlu1 %279 }
0x1142   :  { %286 = vst.msk [vmem:[#allocation8] sm:$0x1] %vm285_vm10, %v280_v30 }
0x1144   :  { %281 = vrot.lane.b32.xlu2 %v278_v39, %s1107_s3 }
0x1149   :  { %v368_v52 = vpop.permute.xlu1 %367 }
0x114a   :  { %372 = vst.msk [vmem:[#allocation8 + $0x9] sm:$0x1] %vm285_vm10, %v368_v52 }
0x114c   :  { %450 = vrot.lane.b32.xlu2 %v448_v53, %s1107_s3 }
0x1151   :  { %v536_v45 = vpop.permute.xlu1 %535 }
0x1152   :  { %541 = vst.msk [vmem:[#allocation8 + $0x3] sm:$0x1] %vm285_vm10, %v536_v45 }
0x1154   :  { %537 = vrot.lane.b32.xlu2 %v534_v7, %s1107_s3 }
0x1159   :  { %v623_v54 = vpop.permute.xlu1 %622 }
0x115a   :  { %627 = vst.msk [vmem:[#allocation8 + $0xc] sm:$0x1] %vm285_vm10, %v623_v54 }
0x115c   :  { %705 = vrot.lane.b32.xlu2 %v703_v1, %s1107_s3 }
0x1161   :  { %v791_v5 = vpop.permute.xlu1 %790 }
0x1162   :  { %796 = vst.msk [vmem:[#allocation8 + $0x6] sm:$0x1] %vm285_vm10, %v791_v5 }
0x1164   :  { %792 = vrot.lane.b32.xlu2 %v789_v41, %s1107_s3 }
0x1196   :  { %v853_v10 = vpop.permute.xlu2 %852 }
0x1197   :  { %v855_v42 = vadd.f32 %v853_v10, %v845_v40 }
0x1199   :  { %994 = vtanh.f32 %v855_v42 }
0x119e   :  { %v282_v43 = vpop.permute.xlu2 %281 }
0x119f   :  { %v995_v13 = vpop.eup %994  ;;  %287 = vst.msk [vmem:[#allocation8 + $0x8] sm:$0x1] %vm285_vm10, %v282_v43 }
0x11a0   :  { %858 = vrot.lane.b32.xlu0 %v995_v13, %s1106_s5 }
0x11a6   :  { %v451_v22 = vpop.permute.xlu2 %450 }
0x11a7   :  { %456 = vst.msk [vmem:[#allocation8 + $0x2] sm:$0x1] %vm285_vm10, %v451_v22 }
0x11a8   :  { %365 = vrot.lane.b32.xlu0 %v363_v38, %s1107_s3 }
0x11ae   :  { %v538_v57 = vpop.permute.xlu2 %537 }
0x11af   :  { %542 = vst.msk [vmem:[#allocation8 + $0xb] sm:$0x1] %vm285_vm10, %v538_v57 }
0x11b0   :  { %452 = vrot.lane.b32.xlu0 %v449_v27, %s1107_s3 }
0x11b6   :  { %v706_v11 = vpop.permute.xlu2 %705 }
0x11b7   :  { %711 = vst.msk [vmem:[#allocation8 + $0x5] sm:$0x1] %vm285_vm10, %v706_v11 }
0x11b8   :  { %620 = vrot.lane.b32.xlu0 %v618_v56, %s1107_s3 }
0x11be   :  { %v793_v58 = vpop.permute.xlu2 %792 }
0x11bf   :  { %797 = vst.msk [vmem:[#allocation8 + $0xe] sm:$0x1] %vm285_vm10, %v793_v58 }
0x11c0   :  { %707 = vrot.lane.b32.xlu0 %v704_v59, %s1107_s3 }
0x1212   :  { %v859_v14 = vpop.permute.xlu0 %858 }
0x1213   :  { %v861_v29 = vmul.f32 %v859_v14, %v842_v35 }
0x1215   :  { %v863_v31 = vrot.slane %v861_v29, 1  ;;  %v864_v32 = vrot.slane %v861_v29, 2  ;;  %v865_v34 = vrot.slane %v861_v29, 3 }
0x1217   :  { %v866_v49 = vsel %vm264_vm13, %v861_v29, %v863_v31  ;;  %v867_v3 = vsel %vm266_vm14, %v864_v32, %v865_v34  ;;  %v869_v17 = vsel %vm270_vm6, %v861_v29, %v863_v31  ;;  %v870_v48 = vsel %vm272_vm7, %v864_v32, %v865_v34 }
0x1218   :  { %v868_v47 = vsel %vm268_vm15, %v866_v49, %v867_v3  ;;  %v871_v50 = vsel %vm274_vm8, %v869_v17, %v870_v48 }
0x1219   :  { %v873_v51 = vperm.slane %v868_v47, 0  ;;  %v872_v12 = vrot.slane %v871_v50, 1 }
0x121a   :  { %v366_v61 = vpop.permute.xlu0 %365 }
0x121b   :  { %371 = vst.msk [vmem:[#allocation8 + $0x1] sm:$0x1] %vm285_vm10, %v366_v61  ;;  %875 = vrot.lane.b32.xlu0 %v873_v51, %s1107_s3  ;;  %v874_v18 = vperm.slane %v872_v12, 0 }
0x121d   :  { %877 = vrot.lane.b32.xlu1 %v874_v18, %s1107_s3 }
0x1222   :  { %v453_v60 = vpop.permute.xlu0 %452 }
0x1223   :  { %457 = vst.msk [vmem:[#allocation8 + $0xa] sm:$0x1] %vm285_vm10, %v453_v60 }
0x122a   :  { %v621_v63 = vpop.permute.xlu0 %620 }
0x122b   :  { %626 = vst.msk [vmem:[#allocation8 + $0x4] sm:$0x1] %vm285_vm10, %v621_v63 }
0x1232   :  { %v708_v0 = vpop.permute.xlu0 %707 }
0x1233   :  { %712 = vst.msk [vmem:[#allocation8 + $0xd] sm:$0x1] %vm285_vm10, %v708_v0 }
0x128d   :  { %v876_v19 = vpop.permute.xlu0 %875 }
0x128e   :  { %881 = vst.msk [vmem:[#allocation8 + $0x7] sm:$0x1] %vm285_vm10, %v876_v19 }
0x128f   :  { %v878_v2 = vpop.permute.xlu1 %877 }
0x1290   :  { %882 = vst.msk [vmem:[#allocation8 + $0xf] sm:$0x1] %vm285_vm10, %v878_v2 }
0x1291   :  { %895 = dma.vmem_to_hbm [thread:$0]  %s888_s7, 256, %s890_s10, [#allocation4], %s1099_s23, %s1099_s23, %s1100_s24  }
0x1292   :  { %1096 = dma.done.wait [#allocation4], 256  }
0x1293   :  { %1097 = vsyncadd [#allocation4], 4294967040 }
0x1294   :  { %900 = vsyncpa [#allocation3], 1 }
0x1295   :  { %901 = vsyncpa [#allocation6], 1 }
0x1296   :  { %902 = vsyncpa [#allocation4], 1 }

</bundles_post_ra>
